<compile_context>
chip_gen: v7x
topology: tpu7x:2x2x1
jax: 0.10.0
libtpu: 0.0.40
codegen_flags: <defaults>
</compile_context>

<pallas_src>
import jax
import jax.numpy as jnp
from jax.experimental import pallas as pl
from jax.experimental.pallas import tpu as pltpu

K_HOPS = 2       # k=2 as in RSGCNet(k=2)
_LANE = 128


def _round_up(x, m):
    return (x + m - 1) // m * m


def _vmem_budget_bytes():
    """Per-generation VMEM budget with headroom for compiler scratch/semaphores."""
    try:
        cap = int(pltpu.get_tpu_info().vmem_capacity_bytes)
        return max(int(cap * 0.75), 32 * 1024 * 1024)
    except Exception:
        # Conservative default: safe even on v7x's 64 MiB per-core VMEM.
        return 48 * 1024 * 1024


# --------------------------------------------------------------------------
# Fast path: A (or A^k) fully VMEM-resident, grid over feature-column tiles.
# --------------------------------------------------------------------------
def _make_resident_kernel(num_hops):
    """h <- A @ h, `num_hops` times, for one feature tile. A stays resident
    across the grid; the running tile lives in vregs (no scratch traffic)."""

    def kernel(a_ref, x_ref, o_ref):
        a = a_ref[...]                 # [N, N]
        h = x_ref[...]                 # [N, tile_f]
        for hop in range(num_hops):    # static unroll (num_hops is 1 or k)
            h32 = jnp.dot(a, h, preferred_element_type=jnp.float32)
            h = h32.astype(a.dtype) if hop + 1 < num_hops else h32
        o_ref[...] = h.astype(o_ref.dtype)

    return kernel


def _resident_call(a_op, x_op, tile_f, num_hops, out_dtype, vmem_budget,
                   single_buffer_a):
    n = a_op.shape[0]
    f = x_op.shape[1]
    grid = (f // tile_f,)

    if single_buffer_a:
        # A's block index never changes -> one buffer is enough (halves VMEM).
        a_spec = pl.BlockSpec((n, n), lambda j: (0, 0),
                              pipeline_mode=pl.Buffered(1))
    else:
        a_spec = pl.BlockSpec((n, n), lambda j: (0, 0))

    flops = 2 * num_hops * n * n * f
    bytes_accessed = (a_op.dtype.itemsize * n * n
                      + x_op.dtype.itemsize * n * f
                      + jnp.dtype(out_dtype).itemsize * n * f)

    return pl.pallas_call(
        _make_resident_kernel(num_hops),
        out_shape=jax.ShapeDtypeStruct((n, f), out_dtype),
        grid_spec=pltpu.PrefetchScalarGridSpec(
            num_scalar_prefetch=0,
            grid=grid,
            in_specs=[
                a_spec,
                pl.BlockSpec((n, tile_f), lambda j: (0, j)),   # X column tile
            ],
            out_specs=pl.BlockSpec((n, tile_f), lambda j: (0, j)),
        ),
        compiler_params=pltpu.CompilerParams(
            dimension_semantics=("parallel",),
            vmem_limit_bytes=vmem_budget),
        cost_estimate=pl.CostEstimate(
            flops=flops, transcendentals=0, bytes_accessed=bytes_accessed),
    )(a_op, x_op)


# --------------------------------------------------------------------------
# Large-N fallback: contraction-tiled matmul (one hop per call).
# --------------------------------------------------------------------------
def _tiled_hop_kernel(a_ref, x_ref, o_ref, acc_ref):
    @pl.when(pl.program_id(2) == 0)
    def _():
        acc_ref[...] = jnp.zeros_like(acc_ref)

    acc_ref[...] += jnp.dot(a_ref[...], x_ref[...],
                            preferred_element_type=jnp.float32)

    @pl.when(pl.program_id(2) == pl.num_programs(2) - 1)
    def _():
        o_ref[...] = acc_ref[...].astype(o_ref.dtype)


def _tiled_call(a_op, x_op, tile_n, tile_f, out_dtype, vmem_budget):
    n = a_op.shape[0]
    f = x_op.shape[1]
    grid = (n // tile_n, f // tile_f, n // tile_n)   # reduction axis last

    flops = 2 * n * n * f
    bytes_accessed = (a_op.dtype.itemsize * n * n * (f // tile_f)
                      + x_op.dtype.itemsize * n * f * (n // tile_n)
                      + jnp.dtype(out_dtype).itemsize * n * f)

    return pl.pallas_call(
        _tiled_hop_kernel,
        out_shape=jax.ShapeDtypeStruct((n, f), out_dtype),
        grid_spec=pltpu.PrefetchScalarGridSpec(
            num_scalar_prefetch=0,
            grid=grid,
            in_specs=[
                pl.BlockSpec((tile_n, tile_n), lambda i, j, k: (i, k)),
                pl.BlockSpec((tile_n, tile_f), lambda i, j, k: (k, j)),
            ],
            out_specs=pl.BlockSpec((tile_n, tile_f), lambda i, j, k: (i, j)),
            scratch_shapes=[pltpu.VMEM((tile_n, tile_f), jnp.float32)],
        ),
        compiler_params=pltpu.CompilerParams(
            dimension_semantics=("parallel", "parallel", "arbitrary"),
            vmem_limit_bytes=vmem_budget),
        cost_estimate=pl.CostEstimate(
            flops=flops, transcendentals=0, bytes_accessed=bytes_accessed),
    )(a_op, x_op)


# --------------------------------------------------------------------------
# Tile pickers (VMEM- and N-aware).
# --------------------------------------------------------------------------
def _pick_tile_f_resident(n, f, a_item, x_item, o_item, budget):
    """Largest lane-dense feature tile such that resident A (single-buffered)
    plus double-buffered X/out tiles fit the budget. None -> tiled fallback."""
    avail = budget - n * n * a_item
    if avail <= 0:
        return None
    for c in [f] + [c for c in range(f - _LANE, 0, -_LANE) if f % c == 0]:
        if 2 * n * c * (x_item + o_item) <= avail:
            return c
    return None


def _pick_tiles_tiled(n, f, x_item, o_item, budget):
    """(tile_n, tile_f) for the contraction-tiled fallback."""
    tile_n = 256 if (n % 256 == 0 and n >= 512) else _LANE
    for c in [c for c in range(f, 0, -_LANE) if f % c == 0]:
        need = (2 * tile_n * tile_n * x_item      # A tiles (double-buffered)
                + 2 * tile_n * c * x_item         # X tiles
                + 2 * tile_n * c * o_item         # out tiles
                + tile_n * c * 4)                 # f32 accumulator scratch
        if need <= budget:
            return tile_n, c
    return tile_n, _LANE


# --------------------------------------------------------------------------
# Public wrapper.
# --------------------------------------------------------------------------
def rsgc_net(adj, features, *, k=K_HOPS, compute_dtype=jnp.bfloat16,
             out_dtype=jnp.float32, tile_f=None, force_tiled=False):
    """RSGCNet forward: H = (D^-1 (A + I))^k X.

    adj:      [N, N] dense adjacency (self loops not required).
    features: [N, F] node features.
    """
    n0 = adj.shape[0]
    f0 = features.shape[1]

    # ---- glue (plain JAX, one-time O(N^2)): self-loop + row-normalize ----
    adj32 = adj.astype(jnp.float32)
    deg = jnp.sum(adj32, axis=1, keepdims=True) + 1.0          # +1 = self loop
    a_hat = adj32.at[jnp.diag_indices(n0)].add(1.0) / deg      # no eye built

    # Hoist the k-hop power out of the kernel when the one-time (k-1)*N^3
    # cost beats the extra (k-1)*N^2*F in-kernel work (i.e. N <= F).
    if k > 1 and n0 <= f0:
        a_op32 = a_hat
        for _ in range(k - 1):
            a_op32 = a_op32 @ a_hat
        num_hops = 1
    else:
        a_op32 = a_hat
        num_hops = k

    # ---- pad N/F to multiples of 128: lane-dense, MXU-friendly.  The zero
    #      rows/cols are inert and are sliced off the output. ----
    n = _round_up(n0, _LANE)
    f = _round_up(f0, _LANE)
    a_op = jnp.pad(a_op32, ((0, n - n0), (0, n - n0))).astype(compute_dtype)
    x_op = jnp.pad(features.astype(compute_dtype),
                   ((0, n - n0), (0, f - f0)))

    vmem_budget = _vmem_budget_bytes()
    a_item = jnp.dtype(compute_dtype).itemsize
    o_item = jnp.dtype(out_dtype).itemsize

    if force_tiled:
        tile_f = None
    elif tile_f is None:
        tile_f = _pick_tile_f_resident(n, f, a_item, a_item, o_item,
                                       vmem_budget)

    if tile_f is not None:
        assert f % tile_f == 0, "tile_f must divide the padded feature dim"
        try:
            out = _resident_call(a_op, x_op, tile_f, num_hops, out_dtype,
                                 vmem_budget, single_buffer_a=True)
        except Exception:
            # pl.Buffered(1) unavailable -> default double-buffered A.
            out = _resident_call(a_op, x_op, tile_f, num_hops, out_dtype,
                                 vmem_budget, single_buffer_a=False)
    else:
        # A (+ pipeline buffers) does not fit VMEM: contraction-tiled matmul,
        # applied once per hop.
        tile_n, tf = _pick_tiles_tiled(n, f, a_item, o_item, vmem_budget)
        h = x_op
        for hop in range(num_hops):
            last = hop + 1 == num_hops
            h = _tiled_call(a_op, h, tile_n, tf,
                            out_dtype if last else compute_dtype, vmem_budget)
        out = h

    return out[:n0, :f0]


# --------------------------------------------------------------------------
if __name__ == "__main__":
    key = jax.random.PRNGKey(0)

    def make_graph(kk, n, f):
        k_adj, k_feat = jax.random.split(kk)
        logits = jax.random.uniform(k_adj, (n, n))
        a = (logits > 0.7).astype(jnp.float32)
        a = jnp.maximum(a, a.T)
        a = a * (1.0 - jnp.eye(n, dtype=jnp.float32))   # strip self loops
        x = jax.random.normal(k_feat, (n, f), dtype=jnp.float32)
        return a, x

    def reference(a, x, k=K_HOPS):
        n = a.shape[0]
        ah = a + jnp.eye(n, dtype=jnp.float32)
        ah = ah / jnp.sum(ah, axis=1, keepdims=True)
        h = x
        for _ in range(k):
            h = ah @ h
        return h

    k0, k1, k2 = jax.random.split(key, 3)

    # 1) Shipped small shape (N=32, F=256): strict f32 check + default bf16.
    adj, feats = make_graph(k0, 32, 256)
    ref = reference(adj, feats)

    out_f32 = jax.block_until_ready(
        rsgc_net(adj, feats, compute_dtype=jnp.float32))
    assert out_f32.shape == (32, 256) and out_f32.dtype == jnp.float32
    assert jnp.allclose(out_f32, ref, atol=1e-4, rtol=1e-4)

    out_fast = jax.block_until_ready(rsgc_net(adj, feats))
    assert jnp.allclose(out_fast, ref, atol=5e-2, rtol=5e-2)

    # 2) Multi-tile resident path (single-buffered A held across grid steps):
    #    N=192, F=512, tile_f=256 -> grid=(2,).
    adj2, feats2 = make_graph(k1, 192, 512)
    ref2 = reference(adj2, feats2)
    out2 = jax.block_until_ready(
        rsgc_net(adj2, feats2, compute_dtype=jnp.float32, tile_f=256))
    assert jnp.allclose(out2, ref2, atol=1e-4, rtol=1e-4)

    # 3) Contraction-tiled large-N fallback, forced at a small shape
    #    (padded N=256 -> tile_n=128, 2 contraction steps).
    out3 = jax.block_until_ready(
        rsgc_net(adj2, feats2, compute_dtype=jnp.float32, force_tiled=True))
    assert jnp.allclose(out3, ref2, atol=1e-4, rtol=1e-4)

    # 4) No-hoist path (N > F): k chained hops inside the kernel.
    adj3, feats3 = make_graph(k2, 256, 128)
    ref3 = reference(adj3, feats3)
    out4 = jax.block_until_ready(
        rsgc_net(adj3, feats3, compute_dtype=jnp.float32))
    assert jnp.allclose(out4, ref3, atol=1e-4, rtol=1e-4)

    print("KERNEL_OK")
</pallas_src>

<mosaic_0001>
module attributes {stable_mosaic.version = 11 : i64} {
  func.func @kernel(%arg0: i32, %arg1: memref<128x128xf32, #tpu.memory_space<vmem>>, %arg2: memref<128x256xf32, #tpu.memory_space<vmem>>, %arg3: memref<128x256xf32, #tpu.memory_space<vmem>>) attributes {dimension_semantics = [#tpu.dimension_semantics<parallel>], iteration_bounds = array<i64: 1>, scalar_prefetch = 0 : i64, scratch_operands = 0 : i64, tpu.core_type = #tpu.core_type<tc>, window_params = [{pipeline_mode = #tpu.pipeline_mode<synchronous>, transform_indices = @transform_0, window_bounds = array<i64: 128, 128>}, {transform_indices = @transform_1, window_bounds = array<i64: 128, 256>}, {transform_indices = @transform_2, window_bounds = array<i64: 128, 256>}]} {
    %c0 = arith.constant 0 : index
    %c0_0 = arith.constant 0 : index
    %0 = vector.load %arg1[%c0, %c0_0] : memref<128x128xf32, #tpu.memory_space<vmem>>, vector<128x128xf32>
    %c0_1 = arith.constant 0 : index
    %c0_2 = arith.constant 0 : index
    %1 = vector.load %arg2[%c0_1, %c0_2] : memref<128x256xf32, #tpu.memory_space<vmem>>, vector<128x256xf32>
    %cst = arith.constant dense<0.000000e+00> : vector<128x256xf32>
    %2 = tpu.matmul %0, %1, %cst {dimension_numbers = #tpu.dot_dimension_numbers<[1], [0], [0], [1], [0, 0, 1, 1], [], []>} : vector<128x128xf32>, vector<128x256xf32>, vector<128x256xf32> -> vector<128x256xf32>
    %c0_3 = arith.constant 0 : index
    %c0_4 = arith.constant 0 : index
    %3 = vector.load %arg3[%c0_3, %c0_4] : memref<128x256xf32, #tpu.memory_space<vmem>>, vector<128x256xf32>
    tpu.vector_store %arg3[%c0_3, %c0_4], %2 {strides = array<i32>} : memref<128x256xf32, #tpu.memory_space<vmem>>, vector<128x256xf32>,
    return
  }
  func.func @transform_0(%arg0: i32) -> (i32, i32) {
    %c0_i32 = arith.constant 0 : i32
    %c0_i32_0 = arith.constant 0 : i32
    %c0_i32_1 = arith.constant 0 : i32
    return %c0_i32, %c0_i32_0 : i32, i32
  }
  func.func @transform_1(%arg0: i32) -> (i32, i32) {
    %c0_i32 = arith.constant 0 : i32
    %c0_i32_0 = arith.constant 0 : i32
    return %c0_i32, %arg0 : i32, i32
  }
  func.func @transform_2(%arg0: i32) -> (i32, i32) {
    %c0_i32 = arith.constant 0 : i32
    %c0_i32_0 = arith.constant 0 : i32
    return %c0_i32, %arg0 : i32, i32
  }
}

module attributes {stable_mosaic.version = 11 : i64} {
  func.func @kernel(%arg0: i32, %arg1: memref<128x128xf32, #tpu.memory_space<vmem>>, %arg2: memref<128x256xf32, #tpu.memory_space<vmem>>, %arg3: memref<128x256xf32, #tpu.memory_space<vmem>>) attributes {dimension_semantics = [#tpu.dimension_semantics<parallel>], iteration_bounds = array<i64: 1>, scalar_prefetch = 0 : i64, scratch_operands = 0 : i64, tpu.core_type = #tpu.core_type<tc>, window_params = [{pipeline_mode = #tpu.pipeline_mode<synchronous>, transform_indices = @transform_0, window_bounds = array<i64: 128, 128>}, {transform_indices = @transform_1, window_bounds = array<i64: 128, 256>}, {transform_indices = @transform_2, window_bounds = array<i64: 128, 256>}]} {
    %c0 = arith.constant 0 : index
    %c0_0 = arith.constant 0 : index
    %0 = vector.load %arg1[%c0, %c0_0] : memref<128x128xf32, #tpu.memory_space<vmem>>, vector<128x128xf32>
    %c0_1 = arith.constant 0 : index
    %c0_2 = arith.constant 0 : index
    %1 = vector.load %arg2[%c0_1, %c0_2] : memref<128x256xf32, #tpu.memory_space<vmem>>, vector<128x256xf32>
    %cst = arith.constant dense<0.000000e+00> : vector<128x256xf32>
    %2 = tpu.matmul %0, %1, %cst {dimension_numbers = #tpu.dot_dimension_numbers<[1], [0], [0], [1], [0, 0, 1, 1], [], []>} : vector<128x128xf32>, vector<128x256xf32>, vector<128x256xf32> -> vector<128x256xf32>
    %c0_3 = arith.constant 0 : index
    %c0_4 = arith.constant 0 : index
    %3 = vector.load %arg3[%c0_3, %c0_4] : memref<128x256xf32, #tpu.memory_space<vmem>>, vector<128x256xf32>
    tpu.vector_store %arg3[%c0_3, %c0_4], %2 {strides = array<i32>} : memref<128x256xf32, #tpu.memory_space<vmem>>, vector<128x256xf32>,
    return
  }
  func.func @transform_0(%arg0: i32) -> (i32, i32) {
    %c0_i32 = arith.constant 0 : i32
    %c0_i32_0 = arith.constant 0 : i32
    %c0_i32_1 = arith.constant 0 : i32
    return %c0_i32, %c0_i32_0 : i32, i32
  }
  func.func @transform_1(%arg0: i32) -> (i32, i32) {
    %c0_i32 = arith.constant 0 : i32
    %c0_i32_0 = arith.constant 0 : i32
    return %c0_i32, %arg0 : i32, i32
  }
  func.func @transform_2(%arg0: i32) -> (i32, i32) {
    %c0_i32 = arith.constant 0 : i32
    %c0_i32_0 = arith.constant 0 : i32
    return %c0_i32, %arg0 : i32, i32
  }
}

</mosaic_0001>

<bundles_post_ra>
// kernel: tpu_custom_call.1
= control target key start
LH: loop header
LB: loop body
LE: loop exit
PB: predicated region body
PF: predicated region fallthrough
CT: control target
= control target key end

     0   :  { %7 = vsyncpa [#allocation3], 0  ;;  %s508_s0 = inlined_call_operand.hbm [shape: f32[128,128], index: 0, kind: input, shape index: {}]   ;;  %s509_s1 = inlined_call_operand.hbm [shape: f32[128,256], index: 1, kind: input, shape index: {}]   ;;  %s510_s2 = inlined_call_operand.hbm [shape: f32[128,256], index: 2, kind: output, shape index: {}]  }
   0x1   :  { %8 = vsyncpa [#allocation6], 0 }
   0x2   :  { %9 = vsyncpa [#allocation4], 0  ;;  %s427_s9 = smov [#allocation2]   ;;  %s355_s13 = scalar_lea.hbm %s508_s0, 2048 }
   0x3   :  { %s15_s10 = sshll.u32 %s427_s9, 4  ;;  %p356_p0 = scmp.ne.s32.totalorder %s508_s0, %s355_s13  ;;  %s16_s10 = int_to_ptr.vmem [resolvable:$true] %s15_s10 }
   0x4   :  { %p359_p1 = scmp.lt.u32.totalorder %s355_s13, %s508_s0 }
   0x6   :  { %p361_p2 = pnand %p359_p1, %p356_p0 }
   0x8   :  { %364 = shalt.err (!%p361_p2)
}
   0x9   :  { %s365_s18 = scalar_lea.vmem %s16_s10, 2048  ;;  %p370_p4 = scmp.lt.s32.totalorder %s16_s10, %s16_s10 }
   0xa   :  { %p366_p3 = scmp.ne.s32.totalorder %s16_s10, %s365_s18  ;;  %p371_p5 = scmp.lt.s32.totalorder %s365_s18, %s365_s18 }
   0xc   :  { %p372_p6 = por %p371_p5, %p370_p4 }
   0xe   :  { %p373_p7 = pnand %p372_p6, %p366_p3 }
  0x10   :  { %376 = shalt.err (!%p373_p7)
}
  0x11   :  { %s428_s19 = smov 128   ;;  %s429_s20 = smov 8  }
  0x12   :  { %21 = dma.hbm_to_vmem [thread:$0]  %s508_s0, 2048, %s16_s10, [#allocation3], %s428_s19, %s428_s19, %s429_s20  }
  0x13   :  { %s430_s23 = smov [#allocation5]   ;;  %s377_s27 = scalar_lea.hbm %s509_s1, 4096 }
  0x14   :  { %s27_s24 = sshll.u32 %s430_s23, 4  ;;  %p378_p8 = scmp.ne.s32.totalorder %s509_s1, %s377_s27  ;;  %s28_s24 = int_to_ptr.vmem [resolvable:$true] %s27_s24 }
  0x15   :  { %p381_p9 = scmp.lt.u32.totalorder %s377_s27, %s509_s1 }
  0x17   :  { %p383_p10 = pnand %p381_p9, %p378_p8 }
  0x19   :  { %386 = shalt.err (!%p383_p10)
}
  0x1a   :  { %s387_s4 = scalar_lea.vmem %s28_s24, 4096  ;;  %p392_p12 = scmp.lt.s32.totalorder %s28_s24, %s28_s24 }
  0x1b   :  { %p388_p11 = scmp.ne.s32.totalorder %s28_s24, %s387_s4  ;;  %p393_p13 = scmp.lt.s32.totalorder %s387_s4, %s387_s4 }
  0x1d   :  { %p394_p0 = por %p393_p13, %p392_p12 }
  0x1f   :  { %p395_p1 = pnand %p394_p0, %p388_p11 }
  0x21   :  { %398 = shalt.err (!%p395_p1)
}
  0x22   :  { %s431_s0 = smov 256   ;;  %s432_s5 = smov 16  }
  0x23   :  { %33 = dma.hbm_to_vmem [thread:$0]  %s509_s1, 4096, %s28_s24, [#allocation6], %s431_s0, %s431_s0, %s432_s5  }
  0x24   :  { %421 = dma.done.wait [#allocation3], 2048  }
  0x25   :  { %422 = vsyncadd [#allocation3], 4294965248 }
  0x26   :  { %423 = dma.done.wait [#allocation6], 4096  }
  0x27   :  { %424 = vsyncadd [#allocation6], 4294963200  ;;  %v433_v0 = vmov 0.0   ;;  %v57_v1 = vld [vmem:[#allocation5 + $0x8] sm:$0xff]  ;;  %v59_v2 = vld [vmem:[#allocation5 + $0x18] sm:$0xff]  ;;  %s434_s1 = smov [#allocation7]  }
  0x28   :  { %152 = vmatprep.mubr.f32.mxu0 %v433_v0  ;;  %200 = vmatprep.mubr.f32.mxu1 %v433_v0  ;;  %v56_v3 = vld [vmem:[#allocation5] sm:$0xff]  ;;  %v299_v4 = vpack.c.bf16 %v59_v2, %v57_v1  ;;  %v58_v5 = vld [vmem:[#allocation5 + $0x10] sm:$0xff]  ;;  %v61_v6 = vld [vmem:[#allocation5 + $0x28] sm:$0xff]  ;;  %s286_s8 = sshll.u32 %s434_s1, 4  ;;  %s287_s8 = int_to_ptr.vmem [resolvable:$true] %s286_s8 }
  0x29   :  { %v63_v7 = vld [vmem:[#allocation5 + $0x38] sm:$0xff]  ;;  %v301_v8 = vpack.c.bf16 %v58_v5, %v56_v3  ;;  %v60_v10 = vld [vmem:[#allocation5 + $0x20] sm:$0xff]  ;;  %v62_v11 = vld [vmem:[#allocation5 + $0x30] sm:$0xff]  ;;  %s399_s9 = scalar_lea.vmem %s287_s8, 4096  ;;  %p404_p3 = scmp.lt.s32.totalorder %s287_s8, %s287_s8 }
  0x2a   :  { %v303_v9 = vpack.c.bf16 %v63_v7, %v61_v6  ;;  %v65_v12 = vld [vmem:[#allocation5 + $0x48] sm:$0xff]  ;;  %300 = vmatprep.subr.bf16.mxu0 %v299_v4  ;;  %331 = vmatprep.subr.bf16.mxu1 %v299_v4  ;;  %v67_v13 = vld [vmem:[#allocation5 + $0x58] sm:$0xff]  ;;  %v305_v14 = vpack.c.bf16 %v62_v11, %v60_v10  ;;  %v64_v16 = vld [vmem:[#allocation5 + $0x40] sm:$0xff]  ;;  %p400_p2 = scmp.ne.s32.totalorder %s287_s8, %s399_s9  ;;  %p405_p4 = scmp.lt.s32.totalorder %s399_s9, %s399_s9 }
  0x2b   :  { %302 = vmatpush1.bf16.msra.mxu0 %v301_v8  ;;  %339 = vmatpush1.bf16.msra.mxu1 %v301_v8  ;;  %v307_v15 = vpack.c.bf16 %v67_v13, %v65_v12  ;;  %v66_v17 = vld [vmem:[#allocation5 + $0x50] sm:$0xff]  ;;  %v69_v18 = vld [vmem:[#allocation5 + $0x68] sm:$0xff]  ;;  %v71_v19 = vld [vmem:[#allocation5 + $0x78] sm:$0xff] }
  0x2c   :  { %304 = vmatprep.subr.bf16.mxu0 %v303_v9  ;;  %332 = vmatprep.subr.bf16.mxu1 %v303_v9  ;;  %v309_v20 = vpack.c.bf16 %v66_v17, %v64_v16  ;;  %v311_v21 = vpack.c.bf16 %v71_v19, %v69_v18  ;;  %v68_v22 = vld [vmem:[#allocation5 + $0x60] sm:$0xff]  ;;  %v70_v23 = vld [vmem:[#allocation5 + $0x70] sm:$0xff]  ;;  %v73_v24 = vld [vmem:[#allocation5 + $0x88] sm:$0xff]  ;;  %p406_p5 = por %p405_p4, %p404_p3 }
  0x2d   :  { %v75_v25 = vld [vmem:[#allocation5 + $0x98] sm:$0xff]  ;;  %v313_v26 = vpack.c.bf16 %v70_v23, %v68_v22  ;;  %v72_v28 = vld [vmem:[#allocation5 + $0x80] sm:$0xff]  ;;  %v74_v29 = vld [vmem:[#allocation5 + $0x90] sm:$0xff] }
  0x2e   :  { %v315_v27 = vpack.c.bf16 %v75_v25, %v73_v24  ;;  %v77_v30 = vld [vmem:[#allocation5 + $0xa8] sm:$0xff]  ;;  %v79_v31 = vld [vmem:[#allocation5 + $0xb8] sm:$0xff]  ;;  %v317_v32 = vpack.c.bf16 %v74_v29, %v72_v28  ;;  %v76_v34 = vld [vmem:[#allocation5 + $0xa0] sm:$0xff]  ;;  %p407_p6 = pnand %p406_p5, %p400_p2 }
  0x2f   :  { %306 = vmatpush1.bf16.msra.mxu0 %v305_v14  ;;  %340 = vmatpush1.bf16.msra.mxu1 %v305_v14  ;;  %v319_v33 = vpack.c.bf16 %v79_v31, %v77_v30  ;;  %v78_v35 = vld [vmem:[#allocation5 + $0xb0] sm:$0xff]  ;;  %v81_v36 = vld [vmem:[#allocation5 + $0xc8] sm:$0xff]  ;;  %v83_v37 = vld [vmem:[#allocation5 + $0xd8] sm:$0xff] }
  0x30   :  { %308 = vmatprep.subr.bf16.mxu0 %v307_v15  ;;  %333 = vmatprep.subr.bf16.mxu1 %v307_v15  ;;  %v321_v38 = vpack.c.bf16 %v78_v35, %v76_v34  ;;  %v323_v39 = vpack.c.bf16 %v83_v37, %v81_v36  ;;  %v80_v40 = vld [vmem:[#allocation5 + $0xc0] sm:$0xff]  ;;  %v82_v41 = vld [vmem:[#allocation5 + $0xd0] sm:$0xff]  ;;  %v85_v42 = vld [vmem:[#allocation5 + $0xe8] sm:$0xff] }
  0x31   :  { %v87_v43 = vld [vmem:[#allocation5 + $0xf8] sm:$0xff]  ;;  %v325_v44 = vpack.c.bf16 %v82_v41, %v80_v40  ;;  %v84_v46 = vld [vmem:[#allocation5 + $0xe0] sm:$0xff]  ;;  %v86_v47 = vld [vmem:[#allocation5 + $0xf0] sm:$0xff] }
  0x32   :  { %v327_v45 = vpack.c.bf16 %v87_v43, %v85_v42  ;;  %v329_v48 = vpack.c.bf16 %v86_v47, %v84_v46  ;;  %v40_v49 = vld [vmem:[#allocation2] sm:$0xff]  ;;  %v41_v51 = vld [vmem:[#allocation2 + $0x8] sm:$0xff]  ;;  %v42_v53 = vld [vmem:[#allocation2 + $0x10] sm:$0xff] }
  0x33   :  { %310 = vmatpush1.bf16.msra.mxu0 %v309_v20  ;;  %341 = vmatpush1.bf16.msra.mxu1 %v309_v20  ;;  %v48_v50 = vld [vmem:[#allocation2 + $0x40] sm:$0xff]  ;;  %v49_v52 = vld [vmem:[#allocation2 + $0x48] sm:$0xff]  ;;  %v50_v54 = vld [vmem:[#allocation2 + $0x50] sm:$0xff] }
  0x34   :  { %312 = vmatprep.subr.bf16.mxu0 %v311_v21  ;;  %334 = vmatprep.subr.bf16.mxu1 %v311_v21  ;;  %v43_v55 = vld [vmem:[#allocation2 + $0x18] sm:$0xff]  ;;  %v44_v57 = vld [vmem:[#allocation2 + $0x20] sm:$0xff]  ;;  %v45_v59 = vld [vmem:[#allocation2 + $0x28] sm:$0xff] }
  0x35   :  { %v51_v56 = vld [vmem:[#allocation2 + $0x58] sm:$0xff]  ;;  %v52_v58 = vld [vmem:[#allocation2 + $0x60] sm:$0xff]  ;;  %v53_v60 = vld [vmem:[#allocation2 + $0x68] sm:$0xff] }
  0x36   :  { %v46_v61 = vld [vmem:[#allocation2 + $0x30] sm:$0xff]  ;;  %v47_v63 = vld [vmem:[#allocation2 + $0x38] sm:$0xff] }
  0x37   :  { %314 = vmatpush1.bf16.msra.mxu0 %v313_v26  ;;  %342 = vmatpush1.bf16.msra.mxu1 %v313_v26  ;;  %v54_v62 = vld [vmem:[#allocation2 + $0x70] sm:$0xff]  ;;  %v55_v1 = vld [vmem:[#allocation2 + $0x78] sm:$0xff] }
  0x38   :  { %316 = vmatprep.subr.bf16.mxu0 %v315_v27  ;;  %335 = vmatprep.subr.bf16.mxu1 %v315_v27 }
  0x3b   :  { %318 = vmatpush1.bf16.msra.mxu0 %v317_v32  ;;  %343 = vmatpush1.bf16.msra.mxu1 %v317_v32 }
  0x3c   :  { %320 = vmatprep.subr.bf16.mxu0 %v319_v33  ;;  %336 = vmatprep.subr.bf16.mxu1 %v319_v33 }
  0x3f   :  { %322 = vmatpush1.bf16.msra.mxu0 %v321_v38  ;;  %344 = vmatpush1.bf16.msra.mxu1 %v321_v38 }
  0x40   :  { %324 = vmatprep.subr.bf16.mxu0 %v323_v39  ;;  %337 = vmatprep.subr.bf16.mxu1 %v323_v39 }
  0x43   :  { %326 = vmatpush1.bf16.msra.mxu0 %v325_v44  ;;  %345 = vmatpush1.bf16.msra.mxu1 %v325_v44 }
  0x44   :  { %328 = vmatprep.subr.bf16.mxu0 %v327_v45  ;;  %338 = vmatprep.subr.bf16.mxu1 %v327_v45 }
  0x47   :  { %330 = vmatpush1.bf16.msra.mxu0 %v329_v48  ;;  %346 = vmatpush1.bf16.msra.mxu1 %v329_v48 }
  0x4a   :  { %153 = vmatmul.mubr.f32.vlgmr.msra.gmra.mrb[0].mxu0 %v40_v49  ;;  %201 = vmatmul.mubr.f32.vlgmr.msra.gmra.mrb[0].mxu1 %v48_v50 }
  0x4b   :  { %158 = vmatprep.mubr.f32.mxu0 %v433_v0  ;;  %206 = vmatprep.mubr.f32.mxu1 %v433_v0 }
  0x4e   :  { %159 = vmatmul.mubr.f32.gmra.mrb[2].mxu0 %v41_v51  ;;  %207 = vmatmul.mubr.f32.gmra.mrb[2].mxu1 %v49_v52 }
  0x4f   :  { %164 = vmatprep.mubr.f32.mxu0 %v433_v0  ;;  %212 = vmatprep.mubr.f32.mxu1 %v433_v0 }
  0x52   :  { %165 = vmatmul.mubr.f32.gmra.mrb[4].mxu0 %v42_v53  ;;  %213 = vmatmul.mubr.f32.gmra.mrb[4].mxu1 %v50_v54 }
  0x53   :  { %170 = vmatprep.mubr.f32.mxu0 %v433_v0  ;;  %218 = vmatprep.mubr.f32.mxu1 %v433_v0 }
  0x56   :  { %171 = vmatmul.mubr.f32.gmra.mrb[6].mxu0 %v43_v55  ;;  %219 = vmatmul.mubr.f32.gmra.mrb[6].mxu1 %v51_v56 }
  0x57   :  { %176 = vmatprep.mubr.f32.mxu0 %v433_v0  ;;  %224 = vmatprep.mubr.f32.mxu1 %v433_v0 }
  0x5a   :  { %177 = vmatmul.mubr.f32.gmra.mrb[8].mxu0 %v44_v57  ;;  %225 = vmatmul.mubr.f32.gmra.mrb[8].mxu1 %v52_v58 }
  0x5b   :  { %182 = vmatprep.mubr.f32.mxu0 %v433_v0  ;;  %230 = vmatprep.mubr.f32.mxu1 %v433_v0 }
  0x5e   :  { %183 = vmatmul.mubr.f32.gmra.mrb[10].mxu0 %v45_v59  ;;  %231 = vmatmul.mubr.f32.gmra.mrb[10].mxu1 %v53_v60 }
  0x5f   :  { %188 = vmatprep.mubr.f32.mxu0 %v433_v0  ;;  %236 = vmatprep.mubr.f32.mxu1 %v433_v0 }
  0x62   :  { %189 = vmatmul.mubr.f32.gmra.mrb[12].mxu0 %v46_v61  ;;  %237 = vmatmul.mubr.f32.gmra.mrb[12].mxu1 %v54_v62 }
  0x63   :  { %194 = vmatprep.mubr.f32.mxu0 %v433_v0  ;;  %242 = vmatprep.mubr.f32.mxu1 %v433_v0 }
  0x66   :  { %195 = vmatmul.mubr.f32.gmra.mrb[14].mxu0 %v47_v63  ;;  %243 = vmatmul.mubr.f32.gmra.mrb[14].mxu1 %v55_v1 }
 0x11d   :  { %v154_v2 = vpop.f32.mrb[0].mxu0  ;;  %v202_v3 = vpop.f32.mrb[0].mxu1 }
 0x11e   :  { %249 = vst [vmem:[#allocation7] sm:$0xff] %v154_v2  ;;  %265 = vst [vmem:[#allocation7 + $0x80] sm:$0xff] %v202_v3  ;;  %v156_v4 = vpop.f32.mrb[1].mxu0  ;;  %v204_v5 = vpop.f32.mrb[1].mxu1 }
 0x11f   :  { %250 = vst [vmem:[#allocation7 + $0x8] sm:$0xff] %v156_v4  ;;  %266 = vst [vmem:[#allocation7 + $0x88] sm:$0xff] %v204_v5 }
 0x121   :  { %v160_v6 = vpop.f32.mrb[2].mxu0  ;;  %v208_v7 = vpop.f32.mrb[2].mxu1 }
 0x122   :  { %251 = vst [vmem:[#allocation7 + $0x10] sm:$0xff] %v160_v6  ;;  %267 = vst [vmem:[#allocation7 + $0x90] sm:$0xff] %v208_v7  ;;  %v162_v8 = vpop.f32.mrb[3].mxu0  ;;  %v210_v9 = vpop.f32.mrb[3].mxu1 }
 0x123   :  { %252 = vst [vmem:[#allocation7 + $0x18] sm:$0xff] %v162_v8  ;;  %268 = vst [vmem:[#allocation7 + $0x98] sm:$0xff] %v210_v9 }
 0x125   :  { %v166_v0 = vpop.f32.mrb[4].mxu0  ;;  %v214_v10 = vpop.f32.mrb[4].mxu1 }
 0x126   :  { %253 = vst [vmem:[#allocation7 + $0x20] sm:$0xff] %v166_v0  ;;  %269 = vst [vmem:[#allocation7 + $0xa0] sm:$0xff] %v214_v10  ;;  %v168_v11 = vpop.f32.mrb[5].mxu0  ;;  %v216_v12 = vpop.f32.mrb[5].mxu1 }
 0x127   :  { %254 = vst [vmem:[#allocation7 + $0x28] sm:$0xff] %v168_v11  ;;  %270 = vst [vmem:[#allocation7 + $0xa8] sm:$0xff] %v216_v12 }
 0x129   :  { %v172_v13 = vpop.f32.mrb[6].mxu0  ;;  %v220_v14 = vpop.f32.mrb[6].mxu1 }
 0x12a   :  { %255 = vst [vmem:[#allocation7 + $0x30] sm:$0xff] %v172_v13  ;;  %271 = vst [vmem:[#allocation7 + $0xb0] sm:$0xff] %v220_v14  ;;  %v174_v15 = vpop.f32.mrb[7].mxu0  ;;  %v222_v16 = vpop.f32.mrb[7].mxu1 }
 0x12b   :  { %256 = vst [vmem:[#allocation7 + $0x38] sm:$0xff] %v174_v15  ;;  %272 = vst [vmem:[#allocation7 + $0xb8] sm:$0xff] %v222_v16 }
 0x12d   :  { %v178_v17 = vpop.f32.mrb[8].mxu0  ;;  %v226_v18 = vpop.f32.mrb[8].mxu1 }
 0x12e   :  { %257 = vst [vmem:[#allocation7 + $0x40] sm:$0xff] %v178_v17  ;;  %273 = vst [vmem:[#allocation7 + $0xc0] sm:$0xff] %v226_v18  ;;  %v180_v19 = vpop.f32.mrb[9].mxu0  ;;  %v228_v20 = vpop.f32.mrb[9].mxu1 }
 0x12f   :  { %258 = vst [vmem:[#allocation7 + $0x48] sm:$0xff] %v180_v19  ;;  %274 = vst [vmem:[#allocation7 + $0xc8] sm:$0xff] %v228_v20 }
 0x131   :  { %v184_v21 = vpop.f32.mrb[10].mxu0  ;;  %v232_v22 = vpop.f32.mrb[10].mxu1 }
 0x132   :  { %259 = vst [vmem:[#allocation7 + $0x50] sm:$0xff] %v184_v21  ;;  %275 = vst [vmem:[#allocation7 + $0xd0] sm:$0xff] %v232_v22  ;;  %v186_v23 = vpop.f32.mrb[11].mxu0  ;;  %v234_v24 = vpop.f32.mrb[11].mxu1 }
 0x133   :  { %260 = vst [vmem:[#allocation7 + $0x58] sm:$0xff] %v186_v23  ;;  %276 = vst [vmem:[#allocation7 + $0xd8] sm:$0xff] %v234_v24 }
 0x135   :  { %v190_v25 = vpop.f32.mrb[12].mxu0  ;;  %v238_v26 = vpop.f32.mrb[12].mxu1 }
 0x136   :  { %261 = vst [vmem:[#allocation7 + $0x60] sm:$0xff] %v190_v25  ;;  %277 = vst [vmem:[#allocation7 + $0xe0] sm:$0xff] %v238_v26  ;;  %v192_v27 = vpop.f32.mrb[13].mxu0  ;;  %v240_v28 = vpop.f32.mrb[13].mxu1 }
 0x137   :  { %262 = vst [vmem:[#allocation7 + $0x68] sm:$0xff] %v192_v27  ;;  %278 = vst [vmem:[#allocation7 + $0xe8] sm:$0xff] %v240_v28 }
 0x139   :  { %v196_v29 = vpop.f32.mrb[14].mxu0  ;;  %v244_v30 = vpop.f32.mrb[14].mxu1 }
 0x13a   :  { %263 = vst [vmem:[#allocation7 + $0x70] sm:$0xff] %v196_v29  ;;  %279 = vst [vmem:[#allocation7 + $0xf0] sm:$0xff] %v244_v30  ;;  %v198_v31 = vpop.f32.mrb[15].mxu0  ;;  %v246_v32 = vpop.f32.mrb[15].mxu1 }
 0x13b   :  { %264 = vst [vmem:[#allocation7 + $0x78] sm:$0xff] %v198_v31  ;;  %280 = vst [vmem:[#allocation7 + $0xf8] sm:$0xff] %v246_v32 }
 0x13c   :  { %410 = shalt.err (!%p407_p6)
}
 0x13d   :  { %s411_s12 = scalar_lea.hbm %s510_s2, 4096 }
 0x13e   :  { %p412_p7 = scmp.ne.s32.totalorder %s510_s2, %s411_s12  ;;  %p415_p8 = scmp.lt.u32.totalorder %s411_s12, %s510_s2 }
 0x140   :  { %p417_p9 = pnand %p415_p8, %p412_p7 }
 0x142   :  { %420 = shalt.err (!%p417_p9)
}
 0x143   :  { %292 = dma.vmem_to_hbm [thread:$0]  %s287_s8, 4096, %s510_s2, [#allocation4], %s431_s0, %s431_s0, %s432_s5  }
 0x144   :  { %425 = dma.done.wait [#allocation4], 4096  }
 0x145   :  { %426 = vsyncadd [#allocation4], 4294963200 }
 0x146   :  { %296 = vsyncpa [#allocation3], 1 }
 0x147   :  { %297 = vsyncpa [#allocation6], 1 }
 0x148   :  { %298 = vsyncpa [#allocation4], 1 }

// kernel: tpu_custom_call.1
= control target key start
LH: loop header
LB: loop body
LE: loop exit
PB: predicated region body
PF: predicated region fallthrough
CT: control target
= control target key end

     0   :  { %7 = vsyncpa [#allocation3], 0  ;;  %s508_s0 = inlined_call_operand.hbm [shape: f32[128,128], index: 0, kind: input, shape index: {}]   ;;  %s509_s1 = inlined_call_operand.hbm [shape: f32[128,256], index: 1, kind: input, shape index: {}]   ;;  %s510_s2 = inlined_call_operand.hbm [shape: f32[128,256], index: 2, kind: output, shape index: {}]  }
   0x1   :  { %8 = vsyncpa [#allocation6], 0 }
   0x2   :  { %9 = vsyncpa [#allocation4], 0  ;;  %s427_s9 = smov [#allocation2]   ;;  %s355_s13 = scalar_lea.hbm %s508_s0, 2048 }
   0x3   :  { %s15_s10 = sshll.u32 %s427_s9, 4  ;;  %p356_p0 = scmp.ne.s32.totalorder %s508_s0, %s355_s13  ;;  %s16_s10 = int_to_ptr.vmem [resolvable:$true] %s15_s10 }
   0x4   :  { %p359_p1 = scmp.lt.u32.totalorder %s355_s13, %s508_s0 }
   0x6   :  { %p361_p2 = pnand %p359_p1, %p356_p0 }
   0x8   :  { %364 = shalt.err (!%p361_p2)
}
   0x9   :  { %s365_s18 = scalar_lea.vmem %s16_s10, 2048  ;;  %p370_p4 = scmp.lt.s32.totalorder %s16_s10, %s16_s10 }
   0xa   :  { %p366_p3 = scmp.ne.s32.totalorder %s16_s10, %s365_s18  ;;  %p371_p5 = scmp.lt.s32.totalorder %s365_s18, %s365_s18 }
   0xc   :  { %p372_p6 = por %p371_p5, %p370_p4 }
   0xe   :  { %p373_p7 = pnand %p372_p6, %p366_p3 }
  0x10   :  { %376 = shalt.err (!%p373_p7)
}
  0x11   :  { %s428_s19 = smov 128   ;;  %s429_s20 = smov 8  }
  0x12   :  { %21 = dma.hbm_to_vmem [thread:$0]  %s508_s0, 2048, %s16_s10, [#allocation3], %s428_s19, %s428_s19, %s429_s20  }
  0x13   :  { %s430_s23 = smov [#allocation5]   ;;  %s377_s27 = scalar_lea.hbm %s509_s1, 4096 }
  0x14   :  { %s27_s24 = sshll.u32 %s430_s23, 4  ;;  %p378_p8 = scmp.ne.s32.totalorder %s509_s1, %s377_s27  ;;  %s28_s24 = int_to_ptr.vmem [resolvable:$true] %s27_s24 }
  0x15   :  { %p381_p9 = scmp.lt.u32.totalorder %s377_s27, %s509_s1 }
  0x17   :  { %p383_p10 = pnand %p381_p9, %p378_p8 }
  0x19   :  { %386 = shalt.err (!%p383_p10)
}
  0x1a   :  { %s387_s4 = scalar_lea.vmem %s28_s24, 4096  ;;  %p392_p12 = scmp.lt.s32.totalorder %s28_s24, %s28_s24 }
  0x1b   :  { %p388_p11 = scmp.ne.s32.totalorder %s28_s24, %s387_s4  ;;  %p393_p13 = scmp.lt.s32.totalorder %s387_s4, %s387_s4 }
  0x1d   :  { %p394_p0 = por %p393_p13, %p392_p12 }
  0x1f   :  { %p395_p1 = pnand %p394_p0, %p388_p11 }
  0x21   :  { %398 = shalt.err (!%p395_p1)
}
  0x22   :  { %s431_s0 = smov 256   ;;  %s432_s5 = smov 16  }
  0x23   :  { %33 = dma.hbm_to_vmem [thread:$0]  %s509_s1, 4096, %s28_s24, [#allocation6], %s431_s0, %s431_s0, %s432_s5  }
  0x24   :  { %421 = dma.done.wait [#allocation3], 2048  }
  0x25   :  { %422 = vsyncadd [#allocation3], 4294965248 }
  0x26   :  { %423 = dma.done.wait [#allocation6], 4096  }
  0x27   :  { %424 = vsyncadd [#allocation6], 4294963200  ;;  %v433_v0 = vmov 0.0   ;;  %v57_v1 = vld [vmem:[#allocation5 + $0x8] sm:$0xff]  ;;  %v59_v2 = vld [vmem:[#allocation5 + $0x18] sm:$0xff]  ;;  %s434_s1 = smov [#allocation7]  }
  0x28   :  { %152 = vmatprep.mubr.f32.mxu0 %v433_v0  ;;  %200 = vmatprep.mubr.f32.mxu1 %v433_v0  ;;  %v56_v3 = vld [vmem:[#allocation5] sm:$0xff]  ;;  %v299_v4 = vpack.c.bf16 %v59_v2, %v57_v1  ;;  %v58_v5 = vld [vmem:[#allocation5 + $0x10] sm:$0xff]  ;;  %v61_v6 = vld [vmem:[#allocation5 + $0x28] sm:$0xff]  ;;  %s286_s8 = sshll.u32 %s434_s1, 4  ;;  %s287_s8 = int_to_ptr.vmem [resolvable:$true] %s286_s8 }
  0x29   :  { %v63_v7 = vld [vmem:[#allocation5 + $0x38] sm:$0xff]  ;;  %v301_v8 = vpack.c.bf16 %v58_v5, %v56_v3  ;;  %v60_v10 = vld [vmem:[#allocation5 + $0x20] sm:$0xff]  ;;  %v62_v11 = vld [vmem:[#allocation5 + $0x30] sm:$0xff]  ;;  %s399_s9 = scalar_lea.vmem %s287_s8, 4096  ;;  %p404_p3 = scmp.lt.s32.totalorder %s287_s8, %s287_s8 }
  0x2a   :  { %v303_v9 = vpack.c.bf16 %v63_v7, %v61_v6  ;;  %v65_v12 = vld [vmem:[#allocation5 + $0x48] sm:$0xff]  ;;  %300 = vmatprep.subr.bf16.mxu0 %v299_v4  ;;  %331 = vmatprep.subr.bf16.mxu1 %v299_v4  ;;  %v67_v13 = vld [vmem:[#allocation5 + $0x58] sm:$0xff]  ;;  %v305_v14 = vpack.c.bf16 %v62_v11, %v60_v10  ;;  %v64_v16 = vld [vmem:[#allocation5 + $0x40] sm:$0xff]  ;;  %p400_p2 = scmp.ne.s32.totalorder %s287_s8, %s399_s9  ;;  %p405_p4 = scmp.lt.s32.totalorder %s399_s9, %s399_s9 }
  0x2b   :  { %302 = vmatpush1.bf16.msra.mxu0 %v301_v8  ;;  %339 = vmatpush1.bf16.msra.mxu1 %v301_v8  ;;  %v307_v15 = vpack.c.bf16 %v67_v13, %v65_v12  ;;  %v66_v17 = vld [vmem:[#allocation5 + $0x50] sm:$0xff]  ;;  %v69_v18 = vld [vmem:[#allocation5 + $0x68] sm:$0xff]  ;;  %v71_v19 = vld [vmem:[#allocation5 + $0x78] sm:$0xff] }
  0x2c   :  { %304 = vmatprep.subr.bf16.mxu0 %v303_v9  ;;  %332 = vmatprep.subr.bf16.mxu1 %v303_v9  ;;  %v309_v20 = vpack.c.bf16 %v66_v17, %v64_v16  ;;  %v311_v21 = vpack.c.bf16 %v71_v19, %v69_v18  ;;  %v68_v22 = vld [vmem:[#allocation5 + $0x60] sm:$0xff]  ;;  %v70_v23 = vld [vmem:[#allocation5 + $0x70] sm:$0xff]  ;;  %v73_v24 = vld [vmem:[#allocation5 + $0x88] sm:$0xff]  ;;  %p406_p5 = por %p405_p4, %p404_p3 }
  0x2d   :  { %v75_v25 = vld [vmem:[#allocation5 + $0x98] sm:$0xff]  ;;  %v313_v26 = vpack.c.bf16 %v70_v23, %v68_v22  ;;  %v72_v28 = vld [vmem:[#allocation5 + $0x80] sm:$0xff]  ;;  %v74_v29 = vld [vmem:[#allocation5 + $0x90] sm:$0xff] }
  0x2e   :  { %v315_v27 = vpack.c.bf16 %v75_v25, %v73_v24  ;;  %v77_v30 = vld [vmem:[#allocation5 + $0xa8] sm:$0xff]  ;;  %v79_v31 = vld [vmem:[#allocation5 + $0xb8] sm:$0xff]  ;;  %v317_v32 = vpack.c.bf16 %v74_v29, %v72_v28  ;;  %v76_v34 = vld [vmem:[#allocation5 + $0xa0] sm:$0xff]  ;;  %p407_p6 = pnand %p406_p5, %p400_p2 }
  0x2f   :  { %306 = vmatpush1.bf16.msra.mxu0 %v305_v14  ;;  %340 = vmatpush1.bf16.msra.mxu1 %v305_v14  ;;  %v319_v33 = vpack.c.bf16 %v79_v31, %v77_v30  ;;  %v78_v35 = vld [vmem:[#allocation5 + $0xb0] sm:$0xff]  ;;  %v81_v36 = vld [vmem:[#allocation5 + $0xc8] sm:$0xff]  ;;  %v83_v37 = vld [vmem:[#allocation5 + $0xd8] sm:$0xff] }
  0x30   :  { %308 = vmatprep.subr.bf16.mxu0 %v307_v15  ;;  %333 = vmatprep.subr.bf16.mxu1 %v307_v15  ;;  %v321_v38 = vpack.c.bf16 %v78_v35, %v76_v34  ;;  %v323_v39 = vpack.c.bf16 %v83_v37, %v81_v36  ;;  %v80_v40 = vld [vmem:[#allocation5 + $0xc0] sm:$0xff]  ;;  %v82_v41 = vld [vmem:[#allocation5 + $0xd0] sm:$0xff]  ;;  %v85_v42 = vld [vmem:[#allocation5 + $0xe8] sm:$0xff] }
  0x31   :  { %v87_v43 = vld [vmem:[#allocation5 + $0xf8] sm:$0xff]  ;;  %v325_v44 = vpack.c.bf16 %v82_v41, %v80_v40  ;;  %v84_v46 = vld [vmem:[#allocation5 + $0xe0] sm:$0xff]  ;;  %v86_v47 = vld [vmem:[#allocation5 + $0xf0] sm:$0xff] }
  0x32   :  { %v327_v45 = vpack.c.bf16 %v87_v43, %v85_v42  ;;  %v329_v48 = vpack.c.bf16 %v86_v47, %v84_v46  ;;  %v40_v49 = vld [vmem:[#allocation2] sm:$0xff]  ;;  %v41_v51 = vld [vmem:[#allocation2 + $0x8] sm:$0xff]  ;;  %v42_v53 = vld [vmem:[#allocation2 + $0x10] sm:$0xff] }
  0x33   :  { %310 = vmatpush1.bf16.msra.mxu0 %v309_v20  ;;  %341 = vmatpush1.bf16.msra.mxu1 %v309_v20  ;;  %v48_v50 = vld [vmem:[#allocation2 + $0x40] sm:$0xff]  ;;  %v49_v52 = vld [vmem:[#allocation2 + $0x48] sm:$0xff]  ;;  %v50_v54 = vld [vmem:[#allocation2 + $0x50] sm:$0xff] }
  0x34   :  { %312 = vmatprep.subr.bf16.mxu0 %v311_v21  ;;  %334 = vmatprep.subr.bf16.mxu1 %v311_v21  ;;  %v43_v55 = vld [vmem:[#allocation2 + $0x18] sm:$0xff]  ;;  %v44_v57 = vld [vmem:[#allocation2 + $0x20] sm:$0xff]  ;;  %v45_v59 = vld [vmem:[#allocation2 + $0x28] sm:$0xff] }
  0x35   :  { %v51_v56 = vld [vmem:[#allocation2 + $0x58] sm:$0xff]  ;;  %v52_v58 = vld [vmem:[#allocation2 + $0x60] sm:$0xff]  ;;  %v53_v60 = vld [vmem:[#allocation2 + $0x68] sm:$0xff] }
  0x36   :  { %v46_v61 = vld [vmem:[#allocation2 + $0x30] sm:$0xff]  ;;  %v47_v63 = vld [vmem:[#allocation2 + $0x38] sm:$0xff] }
  0x37   :  { %314 = vmatpush1.bf16.msra.mxu0 %v313_v26  ;;  %342 = vmatpush1.bf16.msra.mxu1 %v313_v26  ;;  %v54_v62 = vld [vmem:[#allocation2 + $0x70] sm:$0xff]  ;;  %v55_v1 = vld [vmem:[#allocation2 + $0x78] sm:$0xff] }
  0x38   :  { %316 = vmatprep.subr.bf16.mxu0 %v315_v27  ;;  %335 = vmatprep.subr.bf16.mxu1 %v315_v27 }
  0x3b   :  { %318 = vmatpush1.bf16.msra.mxu0 %v317_v32  ;;  %343 = vmatpush1.bf16.msra.mxu1 %v317_v32 }
  0x3c   :  { %320 = vmatprep.subr.bf16.mxu0 %v319_v33  ;;  %336 = vmatprep.subr.bf16.mxu1 %v319_v33 }
  0x3f   :  { %322 = vmatpush1.bf16.msra.mxu0 %v321_v38  ;;  %344 = vmatpush1.bf16.msra.mxu1 %v321_v38 }
  0x40   :  { %324 = vmatprep.subr.bf16.mxu0 %v323_v39  ;;  %337 = vmatprep.subr.bf16.mxu1 %v323_v39 }
  0x43   :  { %326 = vmatpush1.bf16.msra.mxu0 %v325_v44  ;;  %345 = vmatpush1.bf16.msra.mxu1 %v325_v44 }
  0x44   :  { %328 = vmatprep.subr.bf16.mxu0 %v327_v45  ;;  %338 = vmatprep.subr.bf16.mxu1 %v327_v45 }
  0x47   :  { %330 = vmatpush1.bf16.msra.mxu0 %v329_v48  ;;  %346 = vmatpush1.bf16.msra.mxu1 %v329_v48 }
  0x4a   :  { %153 = vmatmul.mubr.f32.vlgmr.msra.gmra.mrb[0].mxu0 %v40_v49  ;;  %201 = vmatmul.mubr.f32.vlgmr.msra.gmra.mrb[0].mxu1 %v48_v50 }
  0x4b   :  { %158 = vmatprep.mubr.f32.mxu0 %v433_v0  ;;  %206 = vmatprep.mubr.f32.mxu1 %v433_v0 }
  0x4e   :  { %159 = vmatmul.mubr.f32.gmra.mrb[2].mxu0 %v41_v51  ;;  %207 = vmatmul.mubr.f32.gmra.mrb[2].mxu1 %v49_v52 }
  0x4f   :  { %164 = vmatprep.mubr.f32.mxu0 %v433_v0  ;;  %212 = vmatprep.mubr.f32.mxu1 %v433_v0 }
  0x52   :  { %165 = vmatmul.mubr.f32.gmra.mrb[4].mxu0 %v42_v53  ;;  %213 = vmatmul.mubr.f32.gmra.mrb[4].mxu1 %v50_v54 }
  0x53   :  { %170 = vmatprep.mubr.f32.mxu0 %v433_v0  ;;  %218 = vmatprep.mubr.f32.mxu1 %v433_v0 }
  0x56   :  { %171 = vmatmul.mubr.f32.gmra.mrb[6].mxu0 %v43_v55  ;;  %219 = vmatmul.mubr.f32.gmra.mrb[6].mxu1 %v51_v56 }
  0x57   :  { %176 = vmatprep.mubr.f32.mxu0 %v433_v0  ;;  %224 = vmatprep.mubr.f32.mxu1 %v433_v0 }
  0x5a   :  { %177 = vmatmul.mubr.f32.gmra.mrb[8].mxu0 %v44_v57  ;;  %225 = vmatmul.mubr.f32.gmra.mrb[8].mxu1 %v52_v58 }
  0x5b   :  { %182 = vmatprep.mubr.f32.mxu0 %v433_v0  ;;  %230 = vmatprep.mubr.f32.mxu1 %v433_v0 }
  0x5e   :  { %183 = vmatmul.mubr.f32.gmra.mrb[10].mxu0 %v45_v59  ;;  %231 = vmatmul.mubr.f32.gmra.mrb[10].mxu1 %v53_v60 }
  0x5f   :  { %188 = vmatprep.mubr.f32.mxu0 %v433_v0  ;;  %236 = vmatprep.mubr.f32.mxu1 %v433_v0 }
  0x62   :  { %189 = vmatmul.mubr.f32.gmra.mrb[12].mxu0 %v46_v61  ;;  %237 = vmatmul.mubr.f32.gmra.mrb[12].mxu1 %v54_v62 }
  0x63   :  { %194 = vmatprep.mubr.f32.mxu0 %v433_v0  ;;  %242 = vmatprep.mubr.f32.mxu1 %v433_v0 }
  0x66   :  { %195 = vmatmul.mubr.f32.gmra.mrb[14].mxu0 %v47_v63  ;;  %243 = vmatmul.mubr.f32.gmra.mrb[14].mxu1 %v55_v1 }
 0x11d   :  { %v154_v2 = vpop.f32.mrb[0].mxu0  ;;  %v202_v3 = vpop.f32.mrb[0].mxu1 }
 0x11e   :  { %249 = vst [vmem:[#allocation7] sm:$0xff] %v154_v2  ;;  %265 = vst [vmem:[#allocation7 + $0x80] sm:$0xff] %v202_v3  ;;  %v156_v4 = vpop.f32.mrb[1].mxu0  ;;  %v204_v5 = vpop.f32.mrb[1].mxu1 }
 0x11f   :  { %250 = vst [vmem:[#allocation7 + $0x8] sm:$0xff] %v156_v4  ;;  %266 = vst [vmem:[#allocation7 + $0x88] sm:$0xff] %v204_v5 }
 0x121   :  { %v160_v6 = vpop.f32.mrb[2].mxu0  ;;  %v208_v7 = vpop.f32.mrb[2].mxu1 }
 0x122   :  { %251 = vst [vmem:[#allocation7 + $0x10] sm:$0xff] %v160_v6  ;;  %267 = vst [vmem:[#allocation7 + $0x90] sm:$0xff] %v208_v7  ;;  %v162_v8 = vpop.f32.mrb[3].mxu0  ;;  %v210_v9 = vpop.f32.mrb[3].mxu1 }
 0x123   :  { %252 = vst [vmem:[#allocation7 + $0x18] sm:$0xff] %v162_v8  ;;  %268 = vst [vmem:[#allocation7 + $0x98] sm:$0xff] %v210_v9 }
 0x125   :  { %v166_v0 = vpop.f32.mrb[4].mxu0  ;;  %v214_v10 = vpop.f32.mrb[4].mxu1 }
 0x126   :  { %253 = vst [vmem:[#allocation7 + $0x20] sm:$0xff] %v166_v0  ;;  %269 = vst [vmem:[#allocation7 + $0xa0] sm:$0xff] %v214_v10  ;;  %v168_v11 = vpop.f32.mrb[5].mxu0  ;;  %v216_v12 = vpop.f32.mrb[5].mxu1 }
 0x127   :  { %254 = vst [vmem:[#allocation7 + $0x28] sm:$0xff] %v168_v11  ;;  %270 = vst [vmem:[#allocation7 + $0xa8] sm:$0xff] %v216_v12 }
 0x129   :  { %v172_v13 = vpop.f32.mrb[6].mxu0  ;;  %v220_v14 = vpop.f32.mrb[6].mxu1 }
 0x12a   :  { %255 = vst [vmem:[#allocation7 + $0x30] sm:$0xff] %v172_v13  ;;  %271 = vst [vmem:[#allocation7 + $0xb0] sm:$0xff] %v220_v14  ;;  %v174_v15 = vpop.f32.mrb[7].mxu0  ;;  %v222_v16 = vpop.f32.mrb[7].mxu1 }
 0x12b   :  { %256 = vst [vmem:[#allocation7 + $0x38] sm:$0xff] %v174_v15  ;;  %272 = vst [vmem:[#allocation7 + $0xb8] sm:$0xff] %v222_v16 }
 0x12d   :  { %v178_v17 = vpop.f32.mrb[8].mxu0  ;;  %v226_v18 = vpop.f32.mrb[8].mxu1 }
 0x12e   :  { %257 = vst [vmem:[#allocation7 + $0x40] sm:$0xff] %v178_v17  ;;  %273 = vst [vmem:[#allocation7 + $0xc0] sm:$0xff] %v226_v18  ;;  %v180_v19 = vpop.f32.mrb[9].mxu0  ;;  %v228_v20 = vpop.f32.mrb[9].mxu1 }
 0x12f   :  { %258 = vst [vmem:[#allocation7 + $0x48] sm:$0xff] %v180_v19  ;;  %274 = vst [vmem:[#allocation7 + $0xc8] sm:$0xff] %v228_v20 }
 0x131   :  { %v184_v21 = vpop.f32.mrb[10].mxu0  ;;  %v232_v22 = vpop.f32.mrb[10].mxu1 }
 0x132   :  { %259 = vst [vmem:[#allocation7 + $0x50] sm:$0xff] %v184_v21  ;;  %275 = vst [vmem:[#allocation7 + $0xd0] sm:$0xff] %v232_v22  ;;  %v186_v23 = vpop.f32.mrb[11].mxu0  ;;  %v234_v24 = vpop.f32.mrb[11].mxu1 }
 0x133   :  { %260 = vst [vmem:[#allocation7 + $0x58] sm:$0xff] %v186_v23  ;;  %276 = vst [vmem:[#allocation7 + $0xd8] sm:$0xff] %v234_v24 }
 0x135   :  { %v190_v25 = vpop.f32.mrb[12].mxu0  ;;  %v238_v26 = vpop.f32.mrb[12].mxu1 }
 0x136   :  { %261 = vst [vmem:[#allocation7 + $0x60] sm:$0xff] %v190_v25  ;;  %277 = vst [vmem:[#allocation7 + $0xe0] sm:$0xff] %v238_v26  ;;  %v192_v27 = vpop.f32.mrb[13].mxu0  ;;  %v240_v28 = vpop.f32.mrb[13].mxu1 }
 0x137   :  { %262 = vst [vmem:[#allocation7 + $0x68] sm:$0xff] %v192_v27  ;;  %278 = vst [vmem:[#allocation7 + $0xe8] sm:$0xff] %v240_v28 }
 0x139   :  { %v196_v29 = vpop.f32.mrb[14].mxu0  ;;  %v244_v30 = vpop.f32.mrb[14].mxu1 }
 0x13a   :  { %263 = vst [vmem:[#allocation7 + $0x70] sm:$0xff] %v196_v29  ;;  %279 = vst [vmem:[#allocation7 + $0xf0] sm:$0xff] %v244_v30  ;;  %v198_v31 = vpop.f32.mrb[15].mxu0  ;;  %v246_v32 = vpop.f32.mrb[15].mxu1 }
 0x13b   :  { %264 = vst [vmem:[#allocation7 + $0x78] sm:$0xff] %v198_v31  ;;  %280 = vst [vmem:[#allocation7 + $0xf8] sm:$0xff] %v246_v32 }
 0x13c   :  { %410 = shalt.err (!%p407_p6)
}
 0x13d   :  { %s411_s12 = scalar_lea.hbm %s510_s2, 4096 }
 0x13e   :  { %p412_p7 = scmp.ne.s32.totalorder %s510_s2, %s411_s12  ;;  %p415_p8 = scmp.lt.u32.totalorder %s411_s12, %s510_s2 }
 0x140   :  { %p417_p9 = pnand %p415_p8, %p412_p7 }
 0x142   :  { %420 = shalt.err (!%p417_p9)
}
 0x143   :  { %292 = dma.vmem_to_hbm [thread:$0]  %s287_s8, 4096, %s510_s2, [#allocation4], %s431_s0, %s431_s0, %s432_s5  }
 0x144   :  { %425 = dma.done.wait [#allocation4], 4096  }
 0x145   :  { %426 = vsyncadd [#allocation4], 4294963200 }
 0x146   :  { %296 = vsyncpa [#allocation3], 1 }
 0x147   :  { %297 = vsyncpa [#allocation6], 1 }
 0x148   :  { %298 = vsyncpa [#allocation4], 1 }

</bundles_post_ra>
